<compile_context>
chip_gen: v7x
topology: tpu7x:2x2x1
jax: 0.10.0
libtpu: 0.0.40
codegen_flags: <defaults>
</compile_context>

<pallas_src>
import jax
import jax.numpy as jnp
from jax import lax
from jax.experimental import pallas as pl
from jax.experimental.pallas import tpu as pltpu


def _round_up(x, m):
    return ((x + m - 1) // m) * m


def _head_kernel(x_ref, w_ref, b_ref, o_ref):
    """Fused per-row L2 normalize + Linear tile.

    x_ref: (TR, H)   f32   (row tile of encoder features; bf16 cast in-kernel)
    w_ref: (H, TN)   bf16  (W^T column tile, zero-padded classes; resident)
    b_ref: (1, TN)   f32
    o_ref: (TR, TN)  logits (f32 by default)
    """
    xf = x_ref[...]                                         # (TR, H) f32
    ss = jnp.sum(xf * xf, axis=-1, keepdims=True)           # (TR, 1) f32
    # rsqrt -> EUP slot. Clamp only guards garbage/all-zero clipped rows; for
    # any real row this matches PyTorch's x / x.norm() exactly (f32 norm).
    inv = lax.rsqrt(jnp.maximum(ss, 1e-30))

    h = xf.shape[-1]
    tn = o_ref.shape[-1]
    if tn > h:
        # Scale the smaller (TR, H) operand before the bf16 MXU feed.
        y = jnp.dot((xf * inv).astype(jnp.bfloat16), w_ref[...],
                    preferred_element_type=jnp.float32)
        o_ref[...] = (y + b_ref[...]).astype(o_ref.dtype)
    else:
        # Fold 1/||x|| into the smaller (TR, TN) matmul result.
        y = jnp.dot(xf.astype(jnp.bfloat16), w_ref[...],
                    preferred_element_type=jnp.float32)
        o_ref[...] = (y * inv + b_ref[...]).astype(o_ref.dtype)


def clip_finetune_head(x, w_final, b_final, *, row_tile=2048, col_tile=1024,
                       logits_dtype=jnp.float32, single_buffer_resident=True):
    """x: (B, S, H) features from the encoder (f32).
    w_final: (num_classes, hidden)  (PyTorch nn.Linear weight layout)
    b_final: (num_classes,)
    returns: (B, S, num_classes) logits_dtype
    """
    B, S, H = x.shape
    C = w_final.shape[0]
    rows = B * S

    # Lane-dense output (unmasked full-width vst); hidden dim is left as-is:
    # full-extent blocks satisfy the (8,128) rule and the MXU handles K != 128k.
    C_pad = _round_up(C, 128)
    TN = min(C_pad, _round_up(col_tile, 128))
    n_col = pl.cdiv(C_pad, TN)

    # VMEM budget per TensorCore: 128 MiB on v5e/v6e, 64 MiB on v7x.
    try:
        vmem_cap = int(pltpu.get_tpu_info().vmem_capacity_bytes)
    except Exception:
        vmem_cap = 64 << 20                     # assume the smallest (v7x)
    budget = max(min(int(vmem_cap * 0.7), 96 << 20), 32 << 20)

    single_buffer = bool(single_buffer_resident) and n_col == 1
    resident_bytes = H * TN * 2 * (1 if single_buffer else 2) + 2 * TN * 4

    def _tile_bytes(tr):
        # double-buffered x tile + double-buffered out tile + resident W/b
        return 2 * tr * H * 4 + 2 * tr * TN * 4 + resident_bytes

    if rows <= row_tile:
        TR = rows                               # single full-extent row block
    else:
        TR = _round_up(row_tile, 8)
        # keep >= ~8 row steps so both TCs get work and pipelining overlaps
        TR = min(TR, max(256, _round_up(pl.cdiv(rows, 8), 8)))
        while TR > 64 and _tile_bytes(TR) > budget:
            TR = _round_up(TR // 2, 8)
    n_row = pl.cdiv(rows, TR)

    # No pad / no cast pass over the activations.
    x2d = x.reshape(rows, H).astype(jnp.float32)
    w_t = jnp.transpose(w_final).astype(jnp.bfloat16)       # (H, C)
    b2d = b_final.astype(jnp.float32).reshape(1, C)
    if C_pad != C:
        w_t = jnp.pad(w_t, ((0, 0), (0, C_pad - C)))
        b2d = jnp.pad(b2d, ((0, 0), (0, C_pad - C)))

    cost = pl.CostEstimate(
        flops=2 * rows * H * C_pad,
        transcendentals=rows * n_col,
        bytes_accessed=(x2d.size * 4 * n_col + w_t.size * 2 + b2d.size * 4
                        + rows * C_pad * jnp.dtype(logits_dtype).itemsize),
    )

    def _run(use_single_buffer):
        resident_kw = dict(pipeline_mode=pl.Buffered(1)) if use_single_buffer else {}
        in_specs = [
            # Row-tiled activations: pipelined across the grid.
            pl.BlockSpec((TR, H), lambda i, j: (i, 0)),
            # Weight / bias column tile: constant over rows -> stays resident.
            pl.BlockSpec((H, TN), lambda i, j: (0, j), **resident_kw),
            pl.BlockSpec((1, TN), lambda i, j: (0, j), **resident_kw),
        ]
        out_specs = pl.BlockSpec((TR, TN), lambda i, j: (i, j))
        return pl.pallas_call(
            _head_kernel,
            out_shape=jax.ShapeDtypeStruct((rows, C_pad), logits_dtype),
            grid_spec=pl.GridSpec(
                grid=(n_row, n_col),
                in_specs=in_specs,
                out_specs=out_specs,
            ),
            compiler_params=pltpu.CompilerParams(
                # Independent row and class tiles -> megacore-shardable.
                dimension_semantics=("parallel", "parallel"),
                vmem_limit_bytes=int(budget),
            ),
            cost_estimate=cost,
        )(x2d, w_t, b2d)

    if single_buffer:
        try:
            out = _run(True)
        except Exception:
            # pipeline_mode / Buffered(1) not supported on this JAX version:
            # fall back to the default double-buffered resident weight.
            out = _run(False)
    else:
        out = _run(False)

    if C_pad != C:
        # TODO(synk): could return the C_pad-padded logits and mask padded
        # classes to -inf in the loss to skip this extra pass over the output.
        out = out[:, :C]
    return out.reshape(B, S, C)


def synthetic_encoder(tokens, position_ids, attention_mask, tok_emb, pos_emb):
    """Deterministic stand-in for the injected CLIP encoder (plain JAX glue).

    tokens, position_ids: (B, S) int32
    attention_mask:       (B, S) float32 (1 = keep, 0 = pad)
    returns: (B, S, H) float32 features (plus empty `mem` list, as in PyTorch)
    """
    h = tok_emb[tokens] + pos_emb[position_ids]          # (B, S, H)
    h = h * attention_mask[..., None]                    # mask padded positions
    h = h + 1.0e-3                                       # keep norms nonzero
    return h, []


def clip_finetune_forward(tokens, position_ids, attention_mask, params):
    x, *mem = synthetic_encoder(tokens, position_ids, attention_mask,
                                params["tok_emb"], params["pos_emb"])
    return clip_finetune_head(x, params["w_final"], params["b_final"])


if __name__ == "__main__":
    # Small shapes consistent with the module's forward:
    B, S = 2, 8          # batch, sequence length
    V = 64               # synthetic vocab size
    H = 32               # hidden_size
    C = 16               # num_classes

    key = jax.random.PRNGKey(0)
    k_tok, k_pos, k_w, k_b, k_ids = jax.random.split(key, 5)

    params = {
        "tok_emb": jax.random.normal(k_tok, (V, H), dtype=jnp.float32) * 0.02,
        "pos_emb": jax.random.normal(k_pos, (S, H), dtype=jnp.float32) * 0.02,
        # nn.Linear(hidden_size, num_classes): weight (C, H), bias (C,)
        "w_final": jax.random.normal(k_w, (C, H), dtype=jnp.float32) * 0.1,
        "b_final": jax.random.normal(k_b, (C,), dtype=jnp.float32) * 0.1,
    }

    tokens = jax.random.randint(k_ids, (B, S), 0, V, dtype=jnp.int32)
    position_ids = jnp.broadcast_to(jnp.arange(S, dtype=jnp.int32), (B, S))
    attention_mask = jnp.ones((B, S), dtype=jnp.float32)

    out = clip_finetune_forward(tokens, position_ids, attention_mask, params)
    out = jax.block_until_ready(out)

    # Reference check in plain JAX (f32, no Pallas). Kernel feeds the MXU bf16,
    # so tolerance is the bf16 relative-error scale.
    x_ref, _ = synthetic_encoder(tokens, position_ids, attention_mask,
                                 params["tok_emb"], params["pos_emb"])
    x_ref = x_ref / jnp.linalg.norm(x_ref, axis=-1, keepdims=True)
    ref = x_ref @ params["w_final"].T + params["b_final"]
    assert out.shape == (B, S, C)
    assert jnp.allclose(out, ref, atol=2e-2, rtol=2e-2)

    print("KERNEL_OK")
</pallas_src>

<mosaic_0001>
module attributes {stable_mosaic.version = 11 : i64} {
  func.func @_head_kernel(%arg0: i32, %arg1: i32, %arg2: memref<16x32xf32, #tpu.memory_space<vmem>>, %arg3: memref<32x128xbf16, #tpu.memory_space<vmem>>, %arg4: memref<1x128xf32, #tpu.memory_space<vmem>>, %arg5: memref<16x128xf32, #tpu.memory_space<vmem>>) attributes {dimension_semantics = [#tpu.dimension_semantics<parallel>, #tpu.dimension_semantics<parallel>], iteration_bounds = array<i64: 1, 1>, scalar_prefetch = 0 : i64, scratch_operands = 0 : i64, tpu.core_type = #tpu.core_type<tc>, window_params = [{transform_indices = @transform_0, window_bounds = array<i64: 16, 32>}, {pipeline_mode = #tpu.pipeline_mode<synchronous>, transform_indices = @transform_1, window_bounds = array<i64: 32, 128>}, {pipeline_mode = #tpu.pipeline_mode<synchronous>, transform_indices = @transform_2, window_bounds = array<i64: 1, 128>}, {transform_indices = @transform_3, window_bounds = array<i64: 16, 128>}]} {
    %c0 = arith.constant 0 : index
    %c0_0 = arith.constant 0 : index
    %0 = vector.load %arg2[%c0, %c0_0] : memref<16x32xf32, #tpu.memory_space<vmem>>, vector<16x32xf32>
    %1 = arith.mulf %0, %0 : vector<16x32xf32>
    %cst = arith.constant dense<0.000000e+00> : vector<16xf32>
    %2 = vector.multi_reduction <add>, %1, %cst [1] : vector<16x32xf32> to vector<16xf32>
    %3 = vector.shape_cast %2 : vector<16xf32> to vector<16x1xf32>
    %cst_1 = arith.constant 1.000000e-30 : f32
    %4 = vector.broadcast %cst_1 : f32 to vector<16x1xf32>
    %5 = arith.maximumf %3, %4 : vector<16x1xf32>
    %6 = math.rsqrt %5 : vector<16x1xf32>
    %7 = vector.broadcast %6 : vector<16x1xf32> to vector<16x32xf32>
    %8 = arith.mulf %0, %7 : vector<16x32xf32>
    %9 = arith.truncf %8 : vector<16x32xf32> to vector<16x32xbf16>
    %c0_2 = arith.constant 0 : index
    %c0_3 = arith.constant 0 : index
    %10 = vector.load %arg3[%c0_2, %c0_3] : memref<32x128xbf16, #tpu.memory_space<vmem>>, vector<32x128xbf16>
    %cst_4 = arith.constant dense<0.000000e+00> : vector<16x128xf32>
    %11 = tpu.matmul %9, %10, %cst_4 {dimension_numbers = #tpu.dot_dimension_numbers<[1], [0], [0], [1], [0, 0, 1, 1], [], []>} : vector<16x32xbf16>, vector<32x128xbf16>, vector<16x128xf32> -> vector<16x128xf32>
    %c0_5 = arith.constant 0 : index
    %c0_6 = arith.constant 0 : index
    %12 = vector.load %arg4[%c0_5, %c0_6] : memref<1x128xf32, #tpu.memory_space<vmem>>, vector<1x128xf32>
    %13 = vector.broadcast %12 : vector<1x128xf32> to vector<16x128xf32>
    %14 = arith.addf %11, %13 : vector<16x128xf32>
    %c0_7 = arith.constant 0 : index
    %c0_8 = arith.constant 0 : index
    %15 = vector.load %arg5[%c0_7, %c0_8] : memref<16x128xf32, #tpu.memory_space<vmem>>, vector<16x128xf32>
    tpu.vector_store %arg5[%c0_7, %c0_8], %14 {strides = array<i32>} : memref<16x128xf32, #tpu.memory_space<vmem>>, vector<16x128xf32>,
    return
  }
  func.func @transform_0(%arg0: i32, %arg1: i32) -> (i32, i32) {
    %c0_i32 = arith.constant 0 : i32
    %c0_i32_0 = arith.constant 0 : i32
    return %arg0, %c0_i32 : i32, i32
  }
  func.func @transform_1(%arg0: i32, %arg1: i32) -> (i32, i32) {
    %c0_i32 = arith.constant 0 : i32
    %c0_i32_0 = arith.constant 0 : i32
    return %c0_i32, %arg1 : i32, i32
  }
  func.func @transform_2(%arg0: i32, %arg1: i32) -> (i32, i32) {
    %c0_i32 = arith.constant 0 : i32
    %c0_i32_0 = arith.constant 0 : i32
    return %c0_i32, %arg1 : i32, i32
  }
  func.func @transform_3(%arg0: i32, %arg1: i32) -> (i32, i32) {
    %c0_i32 = arith.constant 0 : i32
    return %arg0, %arg1 : i32, i32
  }
}

module attributes {stable_mosaic.version = 11 : i64} {
  func.func @_head_kernel(%arg0: i32, %arg1: i32, %arg2: memref<16x32xf32, #tpu.memory_space<vmem>>, %arg3: memref<32x128xbf16, #tpu.memory_space<vmem>>, %arg4: memref<1x128xf32, #tpu.memory_space<vmem>>, %arg5: memref<16x128xf32, #tpu.memory_space<vmem>>) attributes {dimension_semantics = [#tpu.dimension_semantics<parallel>, #tpu.dimension_semantics<parallel>], iteration_bounds = array<i64: 1, 1>, scalar_prefetch = 0 : i64, scratch_operands = 0 : i64, tpu.core_type = #tpu.core_type<tc>, window_params = [{transform_indices = @transform_0, window_bounds = array<i64: 16, 32>}, {transform_indices = @transform_1, window_bounds = array<i64: 32, 128>}, {transform_indices = @transform_2, window_bounds = array<i64: 1, 128>}, {transform_indices = @transform_3, window_bounds = array<i64: 16, 128>}]} {
    %c0 = arith.constant 0 : index
    %c0_0 = arith.constant 0 : index
    %0 = vector.load %arg2[%c0, %c0_0] : memref<16x32xf32, #tpu.memory_space<vmem>>, vector<16x32xf32>
    %1 = arith.mulf %0, %0 : vector<16x32xf32>
    %cst = arith.constant dense<0.000000e+00> : vector<16xf32>
    %2 = vector.multi_reduction <add>, %1, %cst [1] : vector<16x32xf32> to vector<16xf32>
    %3 = vector.shape_cast %2 : vector<16xf32> to vector<16x1xf32>
    %cst_1 = arith.constant 1.000000e-30 : f32
    %4 = vector.broadcast %cst_1 : f32 to vector<16x1xf32>
    %5 = arith.maximumf %3, %4 : vector<16x1xf32>
    %6 = math.rsqrt %5 : vector<16x1xf32>
    %7 = vector.broadcast %6 : vector<16x1xf32> to vector<16x32xf32>
    %8 = arith.mulf %0, %7 : vector<16x32xf32>
    %9 = arith.truncf %8 : vector<16x32xf32> to vector<16x32xbf16>
    %c0_2 = arith.constant 0 : index
    %c0_3 = arith.constant 0 : index
    %10 = vector.load %arg3[%c0_2, %c0_3] : memref<32x128xbf16, #tpu.memory_space<vmem>>, vector<32x128xbf16>
    %cst_4 = arith.constant dense<0.000000e+00> : vector<16x128xf32>
    %11 = tpu.matmul %9, %10, %cst_4 {dimension_numbers = #tpu.dot_dimension_numbers<[1], [0], [0], [1], [0, 0, 1, 1], [], []>} : vector<16x32xbf16>, vector<32x128xbf16>, vector<16x128xf32> -> vector<16x128xf32>
    %c0_5 = arith.constant 0 : index
    %c0_6 = arith.constant 0 : index
    %12 = vector.load %arg4[%c0_5, %c0_6] : memref<1x128xf32, #tpu.memory_space<vmem>>, vector<1x128xf32>
    %13 = vector.broadcast %12 : vector<1x128xf32> to vector<16x128xf32>
    %14 = arith.addf %11, %13 : vector<16x128xf32>
    %c0_7 = arith.constant 0 : index
    %c0_8 = arith.constant 0 : index
    %15 = vector.load %arg5[%c0_7, %c0_8] : memref<16x128xf32, #tpu.memory_space<vmem>>, vector<16x128xf32>
    tpu.vector_store %arg5[%c0_7, %c0_8], %14 {strides = array<i32>} : memref<16x128xf32, #tpu.memory_space<vmem>>, vector<16x128xf32>,
    return
  }
  func.func @transform_0(%arg0: i32, %arg1: i32) -> (i32, i32) {
    %c0_i32 = arith.constant 0 : i32
    %c0_i32_0 = arith.constant 0 : i32
    return %arg0, %c0_i32 : i32, i32
  }
  func.func @transform_1(%arg0: i32, %arg1: i32) -> (i32, i32) {
    %c0_i32 = arith.constant 0 : i32
    %c0_i32_0 = arith.constant 0 : i32
    return %c0_i32, %arg1 : i32, i32
  }
  func.func @transform_2(%arg0: i32, %arg1: i32) -> (i32, i32) {
    %c0_i32 = arith.constant 0 : i32
    %c0_i32_0 = arith.constant 0 : i32
    return %c0_i32, %arg1 : i32, i32
  }
  func.func @transform_3(%arg0: i32, %arg1: i32) -> (i32, i32) {
    %c0_i32 = arith.constant 0 : i32
    return %arg0, %arg1 : i32, i32
  }
}

</mosaic_0001>

<bundles_post_ra>
// kernel: tpu_custom_call.1
= control target key start
LH: loop header
LB: loop body
LE: loop exit
PB: predicated region body
PF: predicated region fallthrough
CT: control target
= control target key end

     0   :  { %8 = vsyncpa [#allocation3], 0  ;;  %s328_s0 = inlined_call_operand.hbm [shape: f32[16,32], index: 0, kind: input, shape index: {}]   ;;  %s329_s1 = inlined_call_operand.hbm [shape: bf16[32,128], index: 1, kind: input, shape index: {}]   ;;  %s330_s2 = inlined_call_operand.vmem [shape: f32[1,128], index: 2, kind: input, shape index: {}]   ;;  %s331_s3 = inlined_call_operand.hbm [shape: f32[16,128], index: 3, kind: output, shape index: {}]  }
   0x1   :  { %9 = vsyncpa [#allocation6], 0 }
   0x2   :  { %10 = vsyncpa [#allocation4], 0  ;;  %s251_s12 = smov [#allocation2]   ;;  %s179_s16 = scalar_lea.hbm %s328_s0, 256 }
   0x3   :  { %s16_s13 = sshll.u32 %s251_s12, 4  ;;  %p180_p0 = scmp.ne.s32.totalorder %s328_s0, %s179_s16  ;;  %s17_s13 = int_to_ptr.vmem [resolvable:$true] %s16_s13 }
   0x4   :  { %p183_p1 = scmp.lt.u32.totalorder %s179_s16, %s328_s0 }
   0x6   :  { %p185_p2 = pnand %p183_p1, %p180_p0 }
   0x8   :  { %188 = shalt.err (!%p185_p2)
}
   0x9   :  { %s189_s21 = scalar_lea.vmem %s17_s13, 256  ;;  %p194_p4 = scmp.lt.s32.totalorder %s17_s13, %s17_s13 }
   0xa   :  { %p190_p3 = scmp.ne.s32.totalorder %s17_s13, %s189_s21  ;;  %p195_p5 = scmp.lt.s32.totalorder %s189_s21, %s189_s21 }
   0xc   :  { %p196_p6 = por %p195_p5, %p194_p4 }
   0xe   :  { %p197_p7 = pnand %p196_p6, %p190_p3 }
  0x10   :  { %200 = shalt.err (!%p197_p7)
}
  0x11   :  { %s252_s22 = smov 128   ;;  %s253_s23 = smov 8  }
  0x12   :  { %22 = dma.hbm_to_vmem [thread:$0]  %s328_s0, 256, %s17_s13, [#allocation3], %s252_s22, %s252_s22, %s253_s23  }
  0x13   :  { %s254_s26 = smov [#allocation5]   ;;  %s201_s30 = scalar_lea.hbm %s329_s1, 256 }
  0x14   :  { %s28_s27 = sshll.u32 %s254_s26, 4  ;;  %p202_p8 = scmp.ne.s32.totalorder %s329_s1, %s201_s30  ;;  %s29_s27 = int_to_ptr.vmem [resolvable:$true] %s28_s27 }
  0x15   :  { %p205_p9 = scmp.lt.u32.totalorder %s201_s30, %s329_s1 }
  0x17   :  { %p207_p10 = pnand %p205_p9, %p202_p8 }
  0x19   :  { %210 = shalt.err (!%p207_p10)
}
  0x1a   :  { %s211_s8 = scalar_lea.vmem %s29_s27, 256  ;;  %p216_p12 = scmp.lt.s32.totalorder %s29_s27, %s29_s27 }
  0x1b   :  { %p212_p11 = scmp.ne.s32.totalorder %s29_s27, %s211_s8  ;;  %p217_p13 = scmp.lt.s32.totalorder %s211_s8, %s211_s8 }
  0x1d   :  { %p218_p0 = por %p217_p13, %p216_p12 }
  0x1f   :  { %p219_p1 = pnand %p218_p0, %p212_p11 }
  0x21   :  { %222 = shalt.err (!%p219_p1)
}
  0x22   :  { %s255_s0 = smov 64   ;;  %s256_s9 = smov 4  }
  0x23   :  { %34 = dma.hbm_to_vmem [thread:$0]  %s329_s1, 256, %s29_s27, [#allocation6], %s255_s0, %s255_s0, %s256_s9  }
  0x24   :  { %245 = dma.done.wait [#allocation3], 256  }
  0x25   :  { %246 = vsyncadd [#allocation3], 4294967040 }
  0x26   :  { %247 = dma.done.wait [#allocation6], 256  }
  0x27   :  { %248 = vsyncadd [#allocation6], 4294967040  ;;  %v44_v0 = vld [vmem:[#allocation2] sm:$0xff]  ;;  %vm48_vm0 = vcmask 261120   ;;  %v45_v1 = vld [vmem:[#allocation2 + $0x8] sm:$0xff]  ;;  %v257_v7 = vmov 0.0  }
  0x28   :  { %v46_v2 = vmul.f32 %v44_v0, %v44_v0  ;;  %v47_v3 = vmul.f32 %v45_v1, %v45_v1  ;;  %v173_v6 = vld [vmem:[#allocation5] sm:$0xff]   ;;  %156 = vmatprep.subr.bf16.mxu0 %v257_v7  ;;  %vm258_vm1 = vmmov 0   ;;  %v174_v8 = vld [vmem:[#allocation5 + $0x8] sm:$0xff]   ;;  %v149_v18 = vld [vmem:[%s330_s2] ss:$0 sm:$0xff]  ;;  %s259_s13 = smov [#allocation7]  }
  0x29   :  { %160 = vmatprep.mubr.msk.bf16.mxu0 %vm258_vm1, %v257_v7  ;;  %157 = vmatpush3.bf16.msra.mxu0 %v173_v6  ;;  %s136_s14 = sshll.u32 %s259_s13, 4  ;;  %s137_s14 = int_to_ptr.vmem [resolvable:$true] %s136_s14 }
  0x2a   :  { %v49_v4 = vsel %vm48_vm0, %v46_v2, 0.0  ;;  %v52_v5 = vsel %vm48_vm0, %v47_v3, 0.0  ;;  %158 = vmatprep.subr.bf16.mxu0 %v257_v7  ;;  %s223_s15 = scalar_lea.vmem %s137_s14, 256  ;;  %p228_p3 = scmp.lt.s32.totalorder %s137_s14, %s137_s14 }
  0x2b   :  { %50 = vadd.xlane.f32.xlu0 %v49_v4  ;;  %p224_p2 = scmp.ne.s32.totalorder %s137_s14, %s223_s15  ;;  %p229_p4 = scmp.lt.s32.totalorder %s223_s15, %s223_s15 }
  0x2d   :  { %159 = vmatpush3.bf16.msra.mxu0 %v174_v8  ;;  %p230_p5 = por %p229_p4, %p228_p3 }
  0x2f   :  { %53 = vadd.xlane.f32.xlu0 %v52_v5  ;;  %p231_p6 = pnand %p230_p5, %p224_p2 }
  0xb8   :  { %v51_v9 = vpop.xlane.xlu0 %50 }
  0xb9   :  { %v55_v10 = vmax.f32 %v51_v9, 1e-30 }
  0xbb   :  { %175 = vrsqrt.f32 %v55_v10 }
  0xbc   :  { %v54_v11 = vpop.xlane.xlu0 %53 }
  0xbd   :  { %v56_v12 = vmax.f32 %v54_v11, 1e-30 }
  0xbf   :  { %177 = vrsqrt.f32 %v56_v12 }
  0xc5   :  { %v176_v13 = vpop.eup %175 }
  0xc6   :  { %v59_v15 = vmul.f32 %v176_v13, %v44_v0 }
  0xc9   :  { %v178_v14 = vpop.eup %177 }
  0xca   :  { %v60_v16 = vmul.f32 %v178_v14, %v45_v1 }
  0xcc   :  { %v61_v17 = vpack.c.bf16 %v60_v16, %v59_v15 }
  0xce   :  { %161 = vmatmul.mubr.msk.bf16.vlgmr.msra.gmra.mrb[0].mxu0 %vm48_vm0, %v61_v17 }
 0x1a1   :  { %v122_v19 = vpop.f32.mrb[0].mxu0 }
 0x1a2   :  { %v123_v20 = vadd.f32 %v149_v18, %v122_v19  ;;  %v162_v21 = vpop.f32.mrb[1].mxu0 }
 0x1a3   :  { %v125_v22 = vpop.f32.mrb[2].mxu0 }
 0x1a4   :  { %129 = vst [vmem:[#allocation7] sm:$0xff] %v123_v20  ;;  %v126_v23 = vadd.f32 %v149_v18, %v125_v22  ;;  %v163_v24 = vpop.f32.mrb[3].mxu0 }
 0x1a6   :  { %130 = vst [vmem:[#allocation7 + $0x8] sm:$0xff] %v126_v23 }
 0x1a7   :  { %234 = shalt.err (!%p231_p6)
}
 0x1a8   :  { %s235_s17 = scalar_lea.hbm %s331_s3, 256 }
 0x1a9   :  { %p236_p7 = scmp.ne.s32.totalorder %s331_s3, %s235_s17  ;;  %p239_p8 = scmp.lt.u32.totalorder %s235_s17, %s331_s3 }
 0x1ab   :  { %p241_p9 = pnand %p239_p8, %p236_p7 }
 0x1ad   :  { %244 = shalt.err (!%p241_p9)
}
 0x1ae   :  { %142 = dma.vmem_to_hbm [thread:$0]  %s137_s14, 256, %s331_s3, [#allocation4], %s252_s22, %s252_s22, %s253_s23  }
 0x1af   :  { %249 = dma.done.wait [#allocation4], 256  }
 0x1b0   :  { %250 = vsyncadd [#allocation4], 4294967040 }
 0x1b1   :  { %146 = vsyncpa [#allocation3], 1 }
 0x1b2   :  { %147 = vsyncpa [#allocation6], 1 }
 0x1b3   :  { %148 = vsyncpa [#allocation4], 1 }

// kernel: tpu_custom_call.1
= control target key start
LH: loop header
LB: loop body
LE: loop exit
PB: predicated region body
PF: predicated region fallthrough
CT: control target
= control target key end

     0   :  { %8 = vsyncpa [#allocation3], 0  ;;  %s328_s0 = inlined_call_operand.hbm [shape: f32[16,32], index: 0, kind: input, shape index: {}]   ;;  %s329_s1 = inlined_call_operand.hbm [shape: bf16[32,128], index: 1, kind: input, shape index: {}]   ;;  %s330_s2 = inlined_call_operand.vmem [shape: f32[1,128], index: 2, kind: input, shape index: {}]   ;;  %s331_s3 = inlined_call_operand.hbm [shape: f32[16,128], index: 3, kind: output, shape index: {}]  }
   0x1   :  { %9 = vsyncpa [#allocation6], 0 }
   0x2   :  { %10 = vsyncpa [#allocation4], 0  ;;  %s251_s12 = smov [#allocation2]   ;;  %s179_s16 = scalar_lea.hbm %s328_s0, 256 }
   0x3   :  { %s16_s13 = sshll.u32 %s251_s12, 4  ;;  %p180_p0 = scmp.ne.s32.totalorder %s328_s0, %s179_s16  ;;  %s17_s13 = int_to_ptr.vmem [resolvable:$true] %s16_s13 }
   0x4   :  { %p183_p1 = scmp.lt.u32.totalorder %s179_s16, %s328_s0 }
   0x6   :  { %p185_p2 = pnand %p183_p1, %p180_p0 }
   0x8   :  { %188 = shalt.err (!%p185_p2)
}
   0x9   :  { %s189_s21 = scalar_lea.vmem %s17_s13, 256  ;;  %p194_p4 = scmp.lt.s32.totalorder %s17_s13, %s17_s13 }
   0xa   :  { %p190_p3 = scmp.ne.s32.totalorder %s17_s13, %s189_s21  ;;  %p195_p5 = scmp.lt.s32.totalorder %s189_s21, %s189_s21 }
   0xc   :  { %p196_p6 = por %p195_p5, %p194_p4 }
   0xe   :  { %p197_p7 = pnand %p196_p6, %p190_p3 }
  0x10   :  { %200 = shalt.err (!%p197_p7)
}
  0x11   :  { %s252_s22 = smov 128   ;;  %s253_s23 = smov 8  }
  0x12   :  { %22 = dma.hbm_to_vmem [thread:$0]  %s328_s0, 256, %s17_s13, [#allocation3], %s252_s22, %s252_s22, %s253_s23  }
  0x13   :  { %s254_s26 = smov [#allocation5]   ;;  %s201_s30 = scalar_lea.hbm %s329_s1, 256 }
  0x14   :  { %s28_s27 = sshll.u32 %s254_s26, 4  ;;  %p202_p8 = scmp.ne.s32.totalorder %s329_s1, %s201_s30  ;;  %s29_s27 = int_to_ptr.vmem [resolvable:$true] %s28_s27 }
  0x15   :  { %p205_p9 = scmp.lt.u32.totalorder %s201_s30, %s329_s1 }
  0x17   :  { %p207_p10 = pnand %p205_p9, %p202_p8 }
  0x19   :  { %210 = shalt.err (!%p207_p10)
}
  0x1a   :  { %s211_s8 = scalar_lea.vmem %s29_s27, 256  ;;  %p216_p12 = scmp.lt.s32.totalorder %s29_s27, %s29_s27 }
  0x1b   :  { %p212_p11 = scmp.ne.s32.totalorder %s29_s27, %s211_s8  ;;  %p217_p13 = scmp.lt.s32.totalorder %s211_s8, %s211_s8 }
  0x1d   :  { %p218_p0 = por %p217_p13, %p216_p12 }
  0x1f   :  { %p219_p1 = pnand %p218_p0, %p212_p11 }
  0x21   :  { %222 = shalt.err (!%p219_p1)
}
  0x22   :  { %s255_s0 = smov 64   ;;  %s256_s9 = smov 4  }
  0x23   :  { %34 = dma.hbm_to_vmem [thread:$0]  %s329_s1, 256, %s29_s27, [#allocation6], %s255_s0, %s255_s0, %s256_s9  }
  0x24   :  { %245 = dma.done.wait [#allocation3], 256  }
  0x25   :  { %246 = vsyncadd [#allocation3], 4294967040 }
  0x26   :  { %247 = dma.done.wait [#allocation6], 256  }
  0x27   :  { %248 = vsyncadd [#allocation6], 4294967040  ;;  %v44_v0 = vld [vmem:[#allocation2] sm:$0xff]  ;;  %vm48_vm0 = vcmask 261120   ;;  %v45_v1 = vld [vmem:[#allocation2 + $0x8] sm:$0xff]  ;;  %v257_v7 = vmov 0.0  }
  0x28   :  { %v46_v2 = vmul.f32 %v44_v0, %v44_v0  ;;  %v47_v3 = vmul.f32 %v45_v1, %v45_v1  ;;  %v173_v6 = vld [vmem:[#allocation5] sm:$0xff]   ;;  %156 = vmatprep.subr.bf16.mxu0 %v257_v7  ;;  %vm258_vm1 = vmmov 0   ;;  %v174_v8 = vld [vmem:[#allocation5 + $0x8] sm:$0xff]   ;;  %v149_v18 = vld [vmem:[%s330_s2] ss:$0 sm:$0xff]  ;;  %s259_s13 = smov [#allocation7]  }
  0x29   :  { %160 = vmatprep.mubr.msk.bf16.mxu0 %vm258_vm1, %v257_v7  ;;  %157 = vmatpush3.bf16.msra.mxu0 %v173_v6  ;;  %s136_s14 = sshll.u32 %s259_s13, 4  ;;  %s137_s14 = int_to_ptr.vmem [resolvable:$true] %s136_s14 }
  0x2a   :  { %v49_v4 = vsel %vm48_vm0, %v46_v2, 0.0  ;;  %v52_v5 = vsel %vm48_vm0, %v47_v3, 0.0  ;;  %158 = vmatprep.subr.bf16.mxu0 %v257_v7  ;;  %s223_s15 = scalar_lea.vmem %s137_s14, 256  ;;  %p228_p3 = scmp.lt.s32.totalorder %s137_s14, %s137_s14 }
  0x2b   :  { %50 = vadd.xlane.f32.xlu0 %v49_v4  ;;  %p224_p2 = scmp.ne.s32.totalorder %s137_s14, %s223_s15  ;;  %p229_p4 = scmp.lt.s32.totalorder %s223_s15, %s223_s15 }
  0x2d   :  { %159 = vmatpush3.bf16.msra.mxu0 %v174_v8  ;;  %p230_p5 = por %p229_p4, %p228_p3 }
  0x2f   :  { %53 = vadd.xlane.f32.xlu0 %v52_v5  ;;  %p231_p6 = pnand %p230_p5, %p224_p2 }
  0xb8   :  { %v51_v9 = vpop.xlane.xlu0 %50 }
  0xb9   :  { %v55_v10 = vmax.f32 %v51_v9, 1e-30 }
  0xbb   :  { %175 = vrsqrt.f32 %v55_v10 }
  0xbc   :  { %v54_v11 = vpop.xlane.xlu0 %53 }
  0xbd   :  { %v56_v12 = vmax.f32 %v54_v11, 1e-30 }
  0xbf   :  { %177 = vrsqrt.f32 %v56_v12 }
  0xc5   :  { %v176_v13 = vpop.eup %175 }
  0xc6   :  { %v59_v15 = vmul.f32 %v176_v13, %v44_v0 }
  0xc9   :  { %v178_v14 = vpop.eup %177 }
  0xca   :  { %v60_v16 = vmul.f32 %v178_v14, %v45_v1 }
  0xcc   :  { %v61_v17 = vpack.c.bf16 %v60_v16, %v59_v15 }
  0xce   :  { %161 = vmatmul.mubr.msk.bf16.vlgmr.msra.gmra.mrb[0].mxu0 %vm48_vm0, %v61_v17 }
 0x1a1   :  { %v122_v19 = vpop.f32.mrb[0].mxu0 }
 0x1a2   :  { %v123_v20 = vadd.f32 %v149_v18, %v122_v19  ;;  %v162_v21 = vpop.f32.mrb[1].mxu0 }
 0x1a3   :  { %v125_v22 = vpop.f32.mrb[2].mxu0 }
 0x1a4   :  { %129 = vst [vmem:[#allocation7] sm:$0xff] %v123_v20  ;;  %v126_v23 = vadd.f32 %v149_v18, %v125_v22  ;;  %v163_v24 = vpop.f32.mrb[3].mxu0 }
 0x1a6   :  { %130 = vst [vmem:[#allocation7 + $0x8] sm:$0xff] %v126_v23 }
 0x1a7   :  { %234 = shalt.err (!%p231_p6)
}
 0x1a8   :  { %s235_s17 = scalar_lea.hbm %s331_s3, 256 }
 0x1a9   :  { %p236_p7 = scmp.ne.s32.totalorder %s331_s3, %s235_s17  ;;  %p239_p8 = scmp.lt.u32.totalorder %s235_s17, %s331_s3 }
 0x1ab   :  { %p241_p9 = pnand %p239_p8, %p236_p7 }
 0x1ad   :  { %244 = shalt.err (!%p241_p9)
}
 0x1ae   :  { %142 = dma.vmem_to_hbm [thread:$0]  %s137_s14, 256, %s331_s3, [#allocation4], %s252_s22, %s252_s22, %s253_s23  }
 0x1af   :  { %249 = dma.done.wait [#allocation4], 256  }
 0x1b0   :  { %250 = vsyncadd [#allocation4], 4294967040 }
 0x1b1   :  { %146 = vsyncpa [#allocation3], 1 }
 0x1b2   :  { %147 = vsyncpa [#allocation6], 1 }
 0x1b3   :  { %148 = vsyncpa [#allocation4], 1 }

</bundles_post_ra>
